<compile_context>
chip_gen: v7x
topology: tpu7x:2x2x1
jax: 0.10.0
libtpu: 0.0.40
codegen_flags: <defaults>
</compile_context>

<pallas_src>
import jax
import jax.numpy as jnp
from jax.experimental import pallas as pl
from jax.experimental.pallas import tpu as pltpu

EPS = 1e-5
NEG_SLOPE = 0.2
LANE = 128


# ----------------------------- Pallas kernel -------------------------------- #

def _make_block_kernel(tl, inv_m):
    """Fused Conv3x3 (as one folded matmul) + BN(batch stats) + LeakyReLU kernel."""

    def kernel(p_ref, w_ref, g_ref, b_ref, o_ref, y_acc, sum_acc, sq_acc):
        # p_ref : (Kp, tl)   bf16  im2col slab tile (spatial+batch on lanes)
        # w_ref : (Co, Kp)   bf16  folded, zero-padded 3x3 weights
        # g_ref : (Co, 1)    f32   BN gamma
        # b_ref : (Co, 1)    f32   BN beta
        # o_ref : (Co, NLp)  out   normalized + LeakyReLU output (written at last step)
        # y_acc : (Co, NLp)  f32   resident pre-BN conv output
        # sum_acc/sq_acc : (Co, 1) f32 per-channel running sum / sum-of-squares
        l = pl.program_id(0)
        nl = pl.num_programs(0)

        @pl.when(l == 0)
        def _init():
            sum_acc[...] = jnp.zeros_like(sum_acc)
            sq_acc[...] = jnp.zeros_like(sq_acc)

        # Single folded matmul on the MXU, f32 accumulate.
        y = jnp.dot(w_ref[...], p_ref[...], preferred_element_type=jnp.float32)

        start = pl.multiple_of(l * tl, tl)
        y_acc[:, pl.ds(start, tl)] = y
        sum_acc[...] += jnp.sum(y, axis=1, keepdims=True)
        sq_acc[...] += jnp.sum(y * y, axis=1, keepdims=True)

        @pl.when(l == nl - 1)
        def _finalize():
            # Zero-padded lane columns contribute exactly 0 to both sums, so
            # dividing by the real element count (inv_m) keeps mean/var exact.
            mean = sum_acc[...] * inv_m
            var = sq_acc[...] * inv_m - mean * mean
            scale = g_ref[...] * jax.lax.rsqrt(var + EPS)
            shift = b_ref[...] - mean * scale
            z = y_acc[...] * scale + shift              # per-channel FMA epilogue
            o_ref[...] = jnp.where(z > 0, z, NEG_SLOPE * z).astype(o_ref.dtype)

    return kernel


# ------------------------------ wrappers ------------------------------------ #

def _round_up(x, m):
    return (x + m - 1) // m * m


def _choose_tile(nlp, cap=512):
    """Largest lane-aligned tile (<= cap) dividing nlp (nlp is a multiple of 128)."""
    if nlp <= cap:
        return nlp
    for t in (512, 256, 128):
        if nlp % t == 0:
            return t
    return 128


def _conv_bn_lrelu_block(act_cnhw, w_hwio, gamma, beta, out_dtype):
    """Conv3x3(SAME) -> BatchNorm2d(batch stats) -> LeakyReLU(0.2), one pallas_call.

    act_cnhw: (C, N, H, W) channel-major activation.  Returns (Co, N, H, W).
    """
    C, N, H, W = act_cnhw.shape
    Co = w_hwio.shape[-1]
    K = 9 * C
    Kp = _round_up(K, 16)            # bf16 sublane pack
    NL = N * H * W
    NLp = _round_up(NL, LANE)        # lane-dense tiles (zero cols don't perturb stats)
    tl = _choose_tile(NLp)
    n_l = NLp // tl

    # --- XLA glue: channel-major im2col slab (tap-major, ci-minor rows) --------
    xp = jnp.pad(act_cnhw, ((0, 0), (0, 0), (1, 1), (1, 1))).astype(jnp.bfloat16)
    taps = [xp[:, :, dy:dy + H, dx:dx + W] for dy in range(3) for dx in range(3)]
    slab = jnp.stack(taps, axis=0).reshape(K, NL)                 # (9C, N*H*W)
    slab = jnp.pad(slab, ((0, Kp - K), (0, NLp - NL)))            # (Kp, NLp) bf16

    w_mat = jnp.transpose(w_hwio, (3, 0, 1, 2)).reshape(Co, K).astype(jnp.bfloat16)
    w_mat = jnp.pad(w_mat, ((0, 0), (0, Kp - K)))                 # (Co, Kp)

    kernel = _make_block_kernel(tl, 1.0 / float(NL))

    out = pl.pallas_call(
        kernel,
        out_shape=jax.ShapeDtypeStruct((Co, NLp), out_dtype),
        grid_spec=pltpu.PrefetchScalarGridSpec(
            num_scalar_prefetch=0,
            grid=(n_l,),
            in_specs=[
                pl.BlockSpec((Kp, tl), lambda l: (0, l)),
                pl.BlockSpec((Co, Kp), lambda l: (0, 0)),
                pl.BlockSpec((Co, 1), lambda l: (0, 0)),
                pl.BlockSpec((Co, 1), lambda l: (0, 0)),
            ],
            out_specs=pl.BlockSpec((Co, NLp), lambda l: (0, 0)),
            scratch_shapes=[
                pltpu.VMEM((Co, NLp), jnp.float32),   # resident pre-BN y (f32)
                pltpu.VMEM((Co, 1), jnp.float32),     # sum
                pltpu.VMEM((Co, 1), jnp.float32),     # sum of squares
            ],
        ),
        compiler_params=pltpu.CompilerParams(
            dimension_semantics=("arbitrary",),
            vmem_limit_bytes=32 * 1024 * 1024,
        ),
    )(slab, w_mat, gamma.reshape(Co, 1), beta.reshape(Co, 1))

    return out[:, :NL].reshape(Co, N, H, W)


def down_forward(x_nchw, params):
    """Pallas implementation of `down.forward` (NCHW in, NCHW out)."""
    N, Ci, H, W = x_nchw.shape
    Hh, Wh = H // 2, W // 2
    # AvgPool2d(2): pure data reduction, XLA glue (fuses with first conv's pad/cast).
    pooled = x_nchw.astype(jnp.float32).reshape(N, Ci, Hh, 2, Wh, 2).mean(axis=(3, 5))
    pooled = jnp.transpose(pooled, (1, 0, 2, 3))                  # (Ci, N, Hh, Wh)
    z1 = _conv_bn_lrelu_block(pooled, params["w1"], params["g1"], params["be1"],
                              jnp.bfloat16)
    z2 = _conv_bn_lrelu_block(z1, params["w2"], params["g2"], params["be2"],
                              jnp.float32)
    return jnp.transpose(z2, (1, 0, 2, 3))                        # back to NCHW


# ------------------------ deterministic parameters --------------------------- #

def init_params(key, in_ch, out_ch):
    k1, k2, k3, k4 = jax.random.split(key, 4)
    return {
        # conv weights stored HWIO (kh, kw, Cin, Cout); synthetic deterministic init
        "w1": jax.random.normal(k1, (3, 3, in_ch, out_ch), jnp.float32) * 0.1,
        "b1": jax.random.normal(k2, (out_ch,), jnp.float32) * 0.1,
        "g1": jnp.ones((out_ch,), jnp.float32),    # BN weight init (PyTorch default)
        "be1": jnp.zeros((out_ch,), jnp.float32),  # BN bias init
        "w2": jax.random.normal(k3, (3, 3, out_ch, out_ch), jnp.float32) * 0.1,
        "b2": jax.random.normal(k4, (out_ch,), jnp.float32) * 0.1,
        "g2": jnp.ones((out_ch,), jnp.float32),
        "be2": jnp.zeros((out_ch,), jnp.float32),
    }


# ------------------------------ pure-JAX reference --------------------------- #

def ref_forward(x_nchw, p):
    x = jnp.transpose(x_nchw, (0, 2, 3, 1)).astype(jnp.float32)
    N, H, W, C = x.shape
    x = x.reshape(N, H // 2, 2, W // 2, 2, C).mean(axis=(2, 4))

    def block(inp, w, b, g, be):
        y = jax.lax.conv_general_dilated(
            inp, w, window_strides=(1, 1), padding="SAME",
            dimension_numbers=("NHWC", "HWIO", "NHWC"),
            precision=jax.lax.Precision.HIGHEST) + b
        mean = y.mean(axis=(0, 1, 2), keepdims=True)
        var = ((y - mean) ** 2).mean(axis=(0, 1, 2), keepdims=True)
        y = (y - mean) * jax.lax.rsqrt(var + EPS) * g + be
        return jnp.where(y > 0, y, NEG_SLOPE * y)

    y = block(x, p["w1"], p["b1"], p["g1"], p["be1"])
    y = block(y, p["w2"], p["b2"], p["g2"], p["be2"])
    return jnp.transpose(y, (0, 3, 1, 2))


# ----------------------------------- main ------------------------------------ #

if __name__ == "__main__":
    key = jax.random.PRNGKey(0)
    kx, kp = jax.random.split(key)
    in_ch, out_ch = 4, 8
    x = jax.random.normal(kx, (2, in_ch, 16, 16), jnp.float32)   # NCHW like PyTorch
    params = init_params(kp, in_ch, out_ch)

    out = jax.block_until_ready(down_forward(x, params))
    ref = jax.block_until_ready(ref_forward(x, params))

    assert out.shape == (2, out_ch, 8, 8), out.shape
    err = float(jnp.max(jnp.abs(out - ref)))
    assert err < 5e-2, f"max abs err {err}"
    print("KERNEL_OK")
</pallas_src>

<mosaic_0001>
module attributes {stable_mosaic.version = 11 : i64} {
  func.func @kernel(%arg0: i32, %arg1: memref<48x128xbf16, #tpu.memory_space<vmem>>, %arg2: memref<8x48xbf16, #tpu.memory_space<vmem>>, %arg3: memref<8x1xf32, #tpu.memory_space<vmem>>, %arg4: memref<8x1xf32, #tpu.memory_space<vmem>>, %arg5: memref<8x128xbf16, #tpu.memory_space<vmem>>, %arg6: memref<8x128xf32, #tpu.memory_space<vmem>>, %arg7: memref<8x1xf32, #tpu.memory_space<vmem>>, %arg8: memref<8x1xf32, #tpu.memory_space<vmem>>) attributes {dimension_semantics = [#tpu.dimension_semantics<arbitrary>], iteration_bounds = array<i64: 1>, scalar_prefetch = 0 : i64, scratch_operands = 3 : i64, tpu.core_type = #tpu.core_type<tc>, window_params = [{transform_indices = @transform_0, window_bounds = array<i64: 48, 128>}, {pipeline_mode = #tpu.pipeline_mode<synchronous>, transform_indices = @transform_1, window_bounds = array<i64: 8, 48>}, {pipeline_mode = #tpu.pipeline_mode<synchronous>, transform_indices = @transform_2, window_bounds = array<i64: 8, 1>}, {pipeline_mode = #tpu.pipeline_mode<synchronous>, transform_indices = @transform_3, window_bounds = array<i64: 8, 1>}, {pipeline_mode = #tpu.pipeline_mode<synchronous>, transform_indices = @transform_4, window_bounds = array<i64: 8, 128>}]} {
    %c0_i32 = arith.constant 0 : i32
    %0 = arith.cmpi eq, %arg0, %c0_i32 : i32
    %1 = arith.extui %0 : i1 to i32
    %c0_i32_0 = arith.constant 0 : i32
    %2 = arith.cmpi ne, %1, %c0_i32_0 : i32
    scf.if %2 {
      %cst_17 = arith.constant 0.000000e+00 : f32
      %24 = vector.broadcast %cst_17 : f32 to vector<8x1xf32>
      %c0_18 = arith.constant 0 : index
      %c0_19 = arith.constant 0 : index
      %25 = vector.load %arg7[%c0_18, %c0_19] : memref<8x1xf32, #tpu.memory_space<vmem>>, vector<8x1xf32>
      tpu.vector_store %arg7[%c0_18, %c0_19], %24 {strides = array<i32>} : memref<8x1xf32, #tpu.memory_space<vmem>>, vector<8x1xf32>,
      %cst_20 = arith.constant 0.000000e+00 : f32
      %26 = vector.broadcast %cst_20 : f32 to vector<8x1xf32>
      %c0_21 = arith.constant 0 : index
      %c0_22 = arith.constant 0 : index
      %27 = vector.load %arg8[%c0_21, %c0_22] : memref<8x1xf32, #tpu.memory_space<vmem>>, vector<8x1xf32>
      tpu.vector_store %arg8[%c0_21, %c0_22], %26 {strides = array<i32>} : memref<8x1xf32, #tpu.memory_space<vmem>>, vector<8x1xf32>,
    } else {
    }
    %c0 = arith.constant 0 : index
    %c0_1 = arith.constant 0 : index
    %3 = vector.load %arg2[%c0, %c0_1] : memref<8x48xbf16, #tpu.memory_space<vmem>>, vector<8x48xbf16>
    %c0_2 = arith.constant 0 : index
    %c0_3 = arith.constant 0 : index
    %4 = vector.load %arg1[%c0_2, %c0_3] : memref<48x128xbf16, #tpu.memory_space<vmem>>, vector<48x128xbf16>
    %cst = arith.constant dense<0.000000e+00> : vector<8x128xf32>
    %5 = tpu.matmul %3, %4, %cst {dimension_numbers = #tpu.dot_dimension_numbers<[1], [0], [0], [1], [0, 0, 1, 1], [], []>} : vector<8x48xbf16>, vector<48x128xbf16>, vector<8x128xf32> -> vector<8x128xf32>
    %c128_i32 = arith.constant 128 : i32
    %6 = arith.muli %arg0, %c128_i32 : i32
    %7 = tpu.assume_multiple %6, 128 : i32
    %c0_4 = arith.constant 0 : index
    %8 = arith.index_cast %7 : i32 to index
    %9 = vector.load %arg6[%c0_4, %8] : memref<8x128xf32, #tpu.memory_space<vmem>>, vector<8x128xf32>
    tpu.vector_store %arg6[%c0_4, %8], %5 {strides = array<i32>} : memref<8x128xf32, #tpu.memory_space<vmem>>, vector<8x128xf32>,
    %c0_5 = arith.constant 0 : index
    %c0_6 = arith.constant 0 : index
    %10 = vector.load %arg7[%c0_5, %c0_6] : memref<8x1xf32, #tpu.memory_space<vmem>>, vector<8x1xf32>
    %cst_7 = arith.constant dense<0.000000e+00> : vector<8xf32>
    %11 = vector.multi_reduction <add>, %5, %cst_7 [1] : vector<8x128xf32> to vector<8xf32>
    %12 = vector.shape_cast %11 : vector<8xf32> to vector<8x1xf32>
    %13 = arith.addf %10, %12 : vector<8x1xf32>
    %c0_8 = arith.constant 0 : index
    %c0_9 = arith.constant 0 : index
    %14 = vector.load %arg7[%c0_8, %c0_9] : memref<8x1xf32, #tpu.memory_space<vmem>>, vector<8x1xf32>
    tpu.vector_store %arg7[%c0_8, %c0_9], %13 {strides = array<i32>} : memref<8x1xf32, #tpu.memory_space<vmem>>, vector<8x1xf32>,
    %c0_10 = arith.constant 0 : index
    %c0_11 = arith.constant 0 : index
    %15 = vector.load %arg8[%c0_10, %c0_11] : memref<8x1xf32, #tpu.memory_space<vmem>>, vector<8x1xf32>
    %16 = arith.mulf %5, %5 : vector<8x128xf32>
    %cst_12 = arith.constant dense<0.000000e+00> : vector<8xf32>
    %17 = vector.multi_reduction <add>, %16, %cst_12 [1] : vector<8x128xf32> to vector<8xf32>
    %18 = vector.shape_cast %17 : vector<8xf32> to vector<8x1xf32>
    %19 = arith.addf %15, %18 : vector<8x1xf32>
    %c0_13 = arith.constant 0 : index
    %c0_14 = arith.constant 0 : index
    %20 = vector.load %arg8[%c0_13, %c0_14] : memref<8x1xf32, #tpu.memory_space<vmem>>, vector<8x1xf32>
    tpu.vector_store %arg8[%c0_13, %c0_14], %19 {strides = array<i32>} : memref<8x1xf32, #tpu.memory_space<vmem>>, vector<8x1xf32>,
    %c0_i32_15 = arith.constant 0 : i32
    %21 = arith.cmpi eq, %arg0, %c0_i32_15 : i32
    %22 = arith.extui %21 : i1 to i32
    %c0_i32_16 = arith.constant 0 : i32
    %23 = arith.cmpi ne, %22, %c0_i32_16 : i32
    scf.if %23 {
      %c0_17 = arith.constant 0 : index
      %c0_18 = arith.constant 0 : index
      %24 = vector.load %arg7[%c0_17, %c0_18] : memref<8x1xf32, #tpu.memory_space<vmem>>, vector<8x1xf32>
      %cst_19 = arith.constant 7.812500e-03 : f32
      %25 = vector.broadcast %cst_19 : f32 to vector<8x1xf32>
      %26 = arith.mulf %24, %25 : vector<8x1xf32>
      %c0_20 = arith.constant 0 : index
      %c0_21 = arith.constant 0 : index
      %27 = vector.load %arg8[%c0_20, %c0_21] : memref<8x1xf32, #tpu.memory_space<vmem>>, vector<8x1xf32>
      %cst_22 = arith.constant 7.812500e-03 : f32
      %28 = vector.broadcast %cst_22 : f32 to vector<8x1xf32>
      %29 = arith.mulf %27, %28 : vector<8x1xf32>
      %30 = arith.mulf %26, %26 : vector<8x1xf32>
      %31 = arith.subf %29, %30 : vector<8x1xf32>
      %c0_23 = arith.constant 0 : index
      %c0_24 = arith.constant 0 : index
      %32 = vector.load %arg3[%c0_23, %c0_24] : memref<8x1xf32, #tpu.memory_space<vmem>>, vector<8x1xf32>
      %cst_25 = arith.constant 9.99999974E-6 : f32
      %33 = vector.broadcast %cst_25 : f32 to vector<8x1xf32>
      %34 = arith.addf %31, %33 : vector<8x1xf32>
      %35 = math.rsqrt %34 : vector<8x1xf32>
      %36 = arith.mulf %32, %35 : vector<8x1xf32>
      %c0_26 = arith.constant 0 : index
      %c0_27 = arith.constant 0 : index
      %37 = vector.load %arg4[%c0_26, %c0_27] : memref<8x1xf32, #tpu.memory_space<vmem>>, vector<8x1xf32>
      %38 = arith.mulf %26, %36 : vector<8x1xf32>
      %39 = arith.subf %37, %38 : vector<8x1xf32>
      %c0_28 = arith.constant 0 : index
      %c0_29 = arith.constant 0 : index
      %40 = vector.load %arg6[%c0_28, %c0_29] : memref<8x128xf32, #tpu.memory_space<vmem>>, vector<8x128xf32>
      %41 = vector.broadcast %36 : vector<8x1xf32> to vector<8x128xf32>
      %42 = arith.mulf %40, %41 : vector<8x128xf32>
      %43 = vector.broadcast %39 : vector<8x1xf32> to vector<8x128xf32>
      %44 = arith.addf %42, %43 : vector<8x128xf32>
      %cst_30 = arith.constant 0.000000e+00 : f32
      %45 = vector.broadcast %cst_30 : f32 to vector<8x128xf32>
      %46 = arith.cmpf ogt, %44, %45 : vector<8x128xf32>
      %cst_31 = arith.constant 2.000000e-01 : f32
      %47 = vector.broadcast %cst_31 : f32 to vector<8x128xf32>
      %48 = arith.mulf %47, %44 : vector<8x128xf32>
      %49 = arith.select %46, %44, %48 : vector<8x128xi1>, vector<8x128xf32>
      %50 = arith.truncf %49 : vector<8x128xf32> to vector<8x128xbf16>
      %c0_32 = arith.constant 0 : index
      %c0_33 = arith.constant 0 : index
      %51 = vector.load %arg5[%c0_32, %c0_33] : memref<8x128xbf16, #tpu.memory_space<vmem>>, vector<8x128xbf16>
      tpu.vector_store %arg5[%c0_32, %c0_33], %50 {strides = array<i32>} : memref<8x128xbf16, #tpu.memory_space<vmem>>, vector<8x128xbf16>,
    } else {
    }
    return
  }
  func.func @transform_0(%arg0: i32) -> (i32, i32) {
    %c0_i32 = arith.constant 0 : i32
    %c0_i32_0 = arith.constant 0 : i32
    return %c0_i32, %arg0 : i32, i32
  }
  func.func @transform_1(%arg0: i32) -> (i32, i32) {
    %c0_i32 = arith.constant 0 : i32
    %c0_i32_0 = arith.constant 0 : i32
    %c0_i32_1 = arith.constant 0 : i32
    return %c0_i32, %c0_i32_0 : i32, i32
  }
  func.func @transform_2(%arg0: i32) -> (i32, i32) {
    %c0_i32 = arith.constant 0 : i32
    %c0_i32_0 = arith.constant 0 : i32
    %c0_i32_1 = arith.constant 0 : i32
    return %c0_i32, %c0_i32_0 : i32, i32
  }
  func.func @transform_3(%arg0: i32) -> (i32, i32) {
    %c0_i32 = arith.constant 0 : i32
    %c0_i32_0 = arith.constant 0 : i32
    %c0_i32_1 = arith.constant 0 : i32
    return %c0_i32, %c0_i32_0 : i32, i32
  }
  func.func @transform_4(%arg0: i32) -> (i32, i32) {
    %c0_i32 = arith.constant 0 : i32
    %c0_i32_0 = arith.constant 0 : i32
    %c0_i32_1 = arith.constant 0 : i32
    return %c0_i32, %c0_i32_0 : i32, i32
  }
}

</mosaic_0001>

<bundles_post_ra>
// kernel: tpu_custom_call.1
= control target key start
LH: loop header
LB: loop body
LE: loop exit
PB: predicated region body
PF: predicated region fallthrough
CT: control target
= control target key end

     0   :  { %9 = vsyncpa [#allocation6], 0  ;;  %s325_s0 = inlined_call_operand.hbm [shape: bf16[48,128], index: 0, kind: input, shape index: {}]   ;;  %s326_s1 = inlined_call_operand.vmem [shape: bf16[8,48], index: 1, kind: input, shape index: {}]   ;;  %s327_s2 = inlined_call_operand.vmem [shape: f32[8,1], index: 2, kind: input, shape index: {}]   ;;  %s328_s3 = inlined_call_operand.vmem [shape: f32[8,1], index: 3, kind: input, shape index: {}]   ;;  %s329_s4 = inlined_call_operand.hbm [shape: bf16[8,128], index: 4, kind: output, shape index: {}]  }
   0x1   :  { %10 = vsyncpa [#allocation7], 0  ;;  %s256_s15 = smov [#allocation5]   ;;  %s208_s19 = scalar_lea.hbm %s325_s0, 384 }
   0x2   :  { %s16_s16 = sshll.u32 %s256_s15, 4  ;;  %p209_p0 = scmp.ne.s32.totalorder %s325_s0, %s208_s19  ;;  %s17_s16 = int_to_ptr.vmem [resolvable:$true] %s16_s16 }
   0x3   :  { %p212_p1 = scmp.lt.u32.totalorder %s208_s19, %s325_s0 }
   0x5   :  { %p214_p2 = pnand %p212_p1, %p209_p0 }
   0x7   :  { %217 = shalt.err (!%p214_p2)
}
   0x8   :  { %s218_s24 = scalar_lea.vmem %s17_s16, 384  ;;  %p223_p4 = scmp.lt.s32.totalorder %s17_s16, %s17_s16 }
   0x9   :  { %p219_p3 = scmp.ne.s32.totalorder %s17_s16, %s218_s24  ;;  %p224_p5 = scmp.lt.s32.totalorder %s218_s24, %s218_s24 }
   0xb   :  { %p225_p6 = por %p224_p5, %p223_p4 }
   0xd   :  { %p226_p7 = pnand %p225_p6, %p219_p3 }
   0xf   :  { %229 = shalt.err (!%p226_p7)
}
  0x10   :  { %s257_s25 = smov 64   ;;  %s258_s26 = smov 4  }
  0x11   :  { %22 = dma.hbm_to_vmem [thread:$0]  %s325_s0, 384, %s17_s16, [#allocation6], %s257_s25, %s257_s25, %s258_s26  }
  0x12   :  { %252 = dma.done.wait [#allocation6], 384  }
  0x13   :  { %253 = vsyncadd [#allocation6], 4294966912  ;;  %v259_v0 = vmov 0.0   ;;  %vm260_vm0 = vmmov 0   ;;  %v203_v1 = vld [vmem:[#allocation5] sm:$0xff]   ;;  %v204_v2 = vld [vmem:[#allocation5 + $0x8] sm:$0xff]  }
  0x14   :  { %184 = vmatprep.subr.bf16.mxu0 %v259_v0  ;;  %190 = vmatprep.mubr.msk.bf16.mxu0 %vm260_vm0, %v259_v0  ;;  %v205_v3 = vld [vmem:[#allocation5 + $0x10] sm:$0xff]   ;;  %vm65_vm1 = vcmask 392192   ;;  %vm37_vm2 = vcmask 7168   ;;  %v261_v10 = vmov 0   ;;  %s262_s7 = smov [#allocation8]  }
  0x15   :  { %185 = vmatpush3.bf16.msra.mxu0 %v203_v1  ;;  %v40_v4 = vld [vmem:[%s326_s1] sm:$0xf]  ;;  %38 = vst.msk [vmem:[#allocation3] sm:$0xff] %vm37_vm2, %v259_v0  ;;  %39 = vst.msk [vmem:[#allocation4] sm:$0xff] %vm37_vm2, %v259_v0  ;;  %201 = vset.pattern.permute.xlu1 %v261_v10  ;;  %s166_s8 = sshll.u32 %s262_s7, 4  ;;  %s167_s8 = int_to_ptr.vmem [resolvable:$true] %s166_s8 }
  0x16   :  { %186 = vmatprep.subr.bf16.mxu0 %v259_v0  ;;  %202 = vset.pattern.permute.xlu0 %v261_v10  ;;  %v135_v24 = vld [vmem:[%s327_s2] sm:$0xff]  ;;  %s230_s2 = scalar_lea.vmem %s167_s8, 64  ;;  %p235_p9 = scmp.lt.s32.totalorder %s167_s8, %s167_s8 }
  0x17   :  { %v139_v27 = vld [vmem:[%s328_s3] sm:$0xff]  ;;  %p231_p8 = scmp.ne.s32.totalorder %s167_s8, %s230_s2  ;;  %p236_p10 = scmp.lt.s32.totalorder %s230_s2, %s230_s2 }
  0x19   :  { %187 = vmatpush3.bf16.msra.mxu0 %v204_v2  ;;  %p237_p11 = por %p236_p10, %p235_p9 }
  0x1a   :  { %188 = vmatprep.subr.bf16.mxu0 %v259_v0 }
  0x1b   :  { %p238_p12 = pnand %p237_p11, %p231_p8 }
  0x1c   :  { %v114_v11 = vld [vmem:[#allocation3] sm:$0xff]  ;;  %v120_v14 = vld [vmem:[#allocation4] sm:$0xff] }
  0x1d   :  { %189 = vmatpush3.bf16.msra.mxu0 %v205_v3 }
  0x20   :  { %191 = vmatmul.mubr.msk.bf16.vlgmr.msra.gmra.mrb[0].mxu0 %vm65_vm1, %v40_v4 }
  0xf3   :  { %v103_v5 = vpop.f32.mrb[0].mxu0 }
  0xf4   :  { %115 = vadd.xlane.f32.xlu0 %v103_v5  ;;  %v192_v6 = vpop.f32.mrb[1].mxu0  ;;  %v121_v9 = vmul.f32 %v103_v5, %v103_v5 }
  0xf5   :  { %v106_v7 = vpop.f32.mrb[2].mxu0 }
  0xf6   :  { %v193_v8 = vpop.f32.mrb[3].mxu0 }
  0xf8   :  { %122 = vadd.xlane.f32.xlu0 %v121_v9 }
 0x181   :  { %v116_v12 = vpop.xlane.xlu0 %115 }
 0x182   :  { %v117_v13 = vadd.f32 %v116_v12, %v114_v11 }
 0x184   :  { %119 = vst.msk [vmem:[#allocation3] sm:$0xff] %vm37_vm2, %v117_v13 }
 0x185   :  { %v123_v15 = vpop.xlane.xlu0 %122 }
 0x186   :  { %v124_v16 = vadd.f32 %v123_v15, %v120_v14 }
 0x188   :  { %125 = vst.msk [vmem:[#allocation4] sm:$0xff] %vm37_vm2, %v124_v16 }
 0x18b   :  { %v129_v17 = vld [vmem:[#allocation3] sm:$0xff] }
 0x18c   :  { %v130_v18 = vmul.f32 0.0078125, %v129_v17 }
 0x18e   :  { %v133_v21 = vmul.f32 %v130_v18, %v130_v18 }
 0x18f   :  { %v131_v19 = vld [vmem:[#allocation4] sm:$0xff] }
 0x190   :  { %v132_v20 = vmul.f32 0.0078125, %v131_v19 }
 0x192   :  { %v134_v22 = vsub.f32 %v132_v20, %v133_v21 }
 0x194   :  { %v136_v23 = vadd.f32 1e-05, %v134_v22 }
 0x196   :  { %206 = vrsqrt.f32 %v136_v23 }
 0x1a0   :  { %v207_v25 = vpop.eup %206 }
 0x1a1   :  { %v138_v26 = vmul.f32 %v207_v25, %v135_v24 }
 0x1a3   :  { %145 = vperm.xlu1 %201, %v138_v26   ;;  %v140_v28 = vmul.f32 %v138_v26, %v130_v18 }
 0x1a5   :  { %v141_v29 = vsub.f32 %v139_v27, %v140_v28 }
 0x1a7   :  { %151 = vperm.xlu1 %201, %v141_v29  }
 0x222   :  { %v146_v30 = vpop.permute.xlu1 %145 }
 0x223   :  { %v148_v31 = vmul.f32 %v146_v30, %v103_v5 }
 0x226   :  { %v152_v32 = vpop.permute.xlu1 %151 }
 0x227   :  { %v154_v33 = vadd.f32 %v152_v32, %v148_v31 }
 0x229   :  { %vm155_vm3 = vcmp.gt.f32.partialorder %v154_v33, 0.0  ;;  %v156_v34 = vmul.f32 0.2, %v154_v33 }
 0x22b   :  { %v157_v35 = vsel %vm155_vm3, %v154_v33, %v156_v34 }
 0x22c   :  { %v158_v36 = vpack.c.bf16 %v157_v35, %v157_v35 }
 0x22e   :  { %159 = vst [vmem:[#allocation8] sm:$0xf] %v158_v36 }
 0x22f   :  { %241 = shalt.err (!%p238_p12)
}
 0x230   :  { %s242_s10 = scalar_lea.hbm %s329_s4, 64 }
 0x231   :  { %p243_p13 = scmp.ne.s32.totalorder %s329_s4, %s242_s10  ;;  %p246_p0 = scmp.lt.u32.totalorder %s242_s10, %s329_s4 }
 0x233   :  { %p248_p1 = pnand %p246_p0, %p243_p13 }
 0x235   :  { %251 = shalt.err (!%p248_p1)
}
 0x236   :  { %169 = dma.vmem_to_hbm [thread:$0]  %s167_s8, 64, %s329_s4, [#allocation7]  }
 0x237   :  { %254 = dma.done.wait [#allocation7], 64  }
 0x238   :  { %255 = vsyncadd [#allocation7], 4294967232 }
 0x239   :  { %173 = vsyncpa [#allocation6], 1 }
 0x23a   :  { %174 = vsyncpa [#allocation7], 1 }

</bundles_post_ra>
